<compile_context>
chip_gen: v7x
topology: tpu7x:2x2x1
jax: 0.10.0
libtpu: 0.0.40
codegen_flags: <defaults>
</compile_context>

<pallas_src>
import functools

import jax
import jax.numpy as jnp
import numpy as np
from jax.experimental import pallas as pl
from jax.experimental.pallas import tpu as pltpu


def _clip_loss_kernel(img_ref, txt_ref, out_ref, *, temperature, num_templates):
    B, D = img_ref.shape          # image_features: (batch, dim)
    E, _ = txt_ref.shape          # text_features:  (expanded_batch, dim)
    T = num_templates
    inv_temp = 1.0 / temperature

    img = img_ref[...].astype(jnp.float32)
    txt = txt_ref[...].astype(jnp.float32)

    # L2 normalize along the feature dim in f32 (rsqrt -> EUP slot).
    img_n = img * jax.lax.rsqrt(jnp.sum(img * img, axis=-1, keepdims=True))
    txt_n = txt * jax.lax.rsqrt(jnp.sum(txt * txt, axis=-1, keepdims=True))

    # MXU operands: keep bf16 if the inputs arrived as bf16 (native MXU path,
    # halved operand footprint); accumulation is f32 either way.
    lhs = img_n.astype(jnp.bfloat16) if img_ref.dtype == jnp.bfloat16 else img_n
    rhs = txt_n.astype(jnp.bfloat16) if txt_ref.dtype == jnp.bfloat16 else txt_n

    # Small logits: logits[b, c] = <img_n[b], txt_n[c]> / temperature   (B, E)
    # The full (E, E) logits of the PyTorch module satisfies
    #   full[e, c] = logits[e // T, c]
    logits = jax.lax.dot_general(
        lhs, rhs, (((1,), (1,)), ((), ())),
        preferred_element_type=jnp.float32) * inv_temp

    # One shared max for both LSEs -> a single exp pass over (B, E).
    m = jnp.max(jnp.max(logits, axis=1, keepdims=True),
                axis=0, keepdims=True)                                    # (1,1)
    exp_l = jnp.exp(logits - m)                                           # (B,E)

    # Row LSE of the full matrix: each small row's LSE is repeated T times.
    lse_r = m + jnp.log(jnp.sum(exp_l, axis=1, keepdims=True))            # (B,1)
    sum_lse_r = jnp.sum(lse_r, axis=0, keepdims=True) * float(T)          # (1,1)

    # Column LSE of the full matrix: each small value appears T times per
    # column, so LSE_full_col(c) = log(T) + LSE over b of logits[:, c].
    lse_c = m + jnp.log(jnp.sum(exp_l, axis=0, keepdims=True))            # (1,E)
    sum_lse_c = (jnp.sum(lse_c, axis=1, keepdims=True)
                 + float(E) * float(np.log(float(T))))                    # (1,1)

    # Diagonal of the full matrix: diag[e] = logits[e // T, e].
    # Band mask via mul + two compares (no int32 divide).
    rowb = jax.lax.broadcasted_iota(jnp.int32, (B, E), 0)
    cole = jax.lax.broadcasted_iota(jnp.int32, (B, E), 1)
    lo = rowb * T
    diag_mask = (cole >= lo) & (cole < lo + T)
    diag_sum = jnp.sum(
        jnp.sum(jnp.where(diag_mask, logits, 0.0), axis=1, keepdims=True),
        axis=0, keepdims=True)                                            # (1,1)

    # clip_loss = (loss_i + loss_t) / 2
    total = (sum_lse_r + sum_lse_c - 2.0 * diag_sum) * (0.5 / float(E))   # (1,1)
    out_ref[0] = jnp.sum(total)                                           # SMEM scalar


def clip_count_loss(image_features, text_features, count_features=None,
                    *, temperature=0.07, count_alpha=0.5):
    B, D = image_features.shape
    E, D2 = text_features.shape
    assert D == D2 and E % B == 0
    T = E // B

    clip1 = pl.pallas_call(
        functools.partial(_clip_loss_kernel, temperature=temperature,
                          num_templates=T),
        out_shape=jax.ShapeDtypeStruct((1,), jnp.float32),
        in_specs=[pl.BlockSpec(memory_space=pltpu.MemorySpace.VMEM),
                  pl.BlockSpec(memory_space=pltpu.MemorySpace.VMEM)],
        out_specs=pl.BlockSpec(memory_space=pltpu.MemorySpace.SMEM),
    )(image_features, text_features)

    clip_loss = clip1[0]

    # count_loss: with the shapes reachable from forward(), group_size ==
    # counts.size(0) // E == 1, so there are no negatives and the per-row term
    # is -log(numer / numer) == 0 exactly.  No compute needed.
    # TODO(synk): group_size > 1 is unreachable from forward() (the ek slice
    # would index out of bounds in PyTorch), so only the g == 1 path exists.
    if count_features is not None:
        group_size = count_features.shape[0] // E
        assert group_size == 1, "forward() only reaches group_size == 1"
        count_loss = jnp.zeros((), jnp.float32) * jnp.float32(count_alpha)
    else:
        count_loss = jnp.zeros((), jnp.float32)

    total_loss = clip_loss + count_loss
    return {"clip_loss": clip_loss, "count_loss": count_loss,
            "total_loss": total_loss}


def _reference(image_features, text_features, count_features=None,
               temperature=0.07, count_alpha=0.5):
    """Pure-JAX reference mirroring the PyTorch forward."""
    B = image_features.shape[0]
    E = text_features.shape[0]
    T = E // B
    img = image_features / jnp.linalg.norm(image_features, axis=-1, keepdims=True)
    txt = text_features / jnp.linalg.norm(text_features, axis=-1, keepdims=True)
    img_rep = jnp.repeat(img, T, axis=0)
    logits = img_rep @ txt.T / temperature
    diag = jnp.diagonal(logits)
    loss_i = jnp.mean(jax.nn.logsumexp(logits, axis=1) - diag)
    loss_t = jnp.mean(jax.nn.logsumexp(logits, axis=0) - diag)
    clip_loss = (loss_i + loss_t) / 2.0
    count_loss = jnp.float32(0.0)
    if count_features is not None:
        ei = img_rep / jnp.linalg.norm(img_rep, axis=-1, keepdims=True)
        ek = txt / jnp.linalg.norm(txt, axis=-1, keepdims=True)
        pos = jnp.sum(ei * ek, axis=-1)
        numer = jnp.exp(pos / temperature)
        count_loss = jnp.mean(-jnp.log(numer / numer)) * count_alpha
    return {"clip_loss": clip_loss, "count_loss": count_loss,
            "total_loss": clip_loss + count_loss}


if __name__ == "__main__":
    key = jax.random.PRNGKey(0)
    B, num_templates, D = 2, 4, 32
    E = B * num_templates
    k1, k2, k3 = jax.random.split(key, 3)
    image_features = jax.random.normal(k1, (B, D), dtype=jnp.float32)
    text_features = jax.random.normal(k2, (E, D), dtype=jnp.float32)
    # count values are only used for group-size bookkeeping (never in the math)
    count_features = jax.random.uniform(k3, (E,), dtype=jnp.float32) * 10.0

    out = clip_count_loss(image_features, text_features, count_features)
    jax.block_until_ready(out)

    ref = _reference(image_features, text_features, count_features)
    for k in ("clip_loss", "count_loss", "total_loss"):
        np.testing.assert_allclose(np.asarray(out[k]), np.asarray(ref[k]),
                                   rtol=1e-4, atol=1e-4)
    print("KERNEL_OK")
</pallas_src>

<mosaic_0001>
module attributes {stable_mosaic.version = 11 : i64} {
  func.func @_clip_loss_kernel(%arg0: memref<2x32xf32, #tpu.memory_space<vmem>>, %arg1: memref<8x32xf32, #tpu.memory_space<vmem>>, %arg2: memref<1xf32, #tpu.memory_space<smem>>) attributes {dimension_semantics = [], scalar_prefetch = 0 : i64, scratch_operands = 0 : i64, tpu.core_type = #tpu.core_type<tc>} {
    %c0 = arith.constant 0 : index
    %c0_0 = arith.constant 0 : index
    %0 = vector.load %arg0[%c0, %c0_0] : memref<2x32xf32, #tpu.memory_space<vmem>>, vector<2x32xf32>
    %c0_1 = arith.constant 0 : index
    %c0_2 = arith.constant 0 : index
    %1 = vector.load %arg1[%c0_1, %c0_2] : memref<8x32xf32, #tpu.memory_space<vmem>>, vector<8x32xf32>
    %2 = arith.mulf %0, %0 : vector<2x32xf32>
    %cst = arith.constant dense<0.000000e+00> : vector<2xf32>
    %3 = vector.multi_reduction <add>, %2, %cst [1] : vector<2x32xf32> to vector<2xf32>
    %4 = vector.shape_cast %3 : vector<2xf32> to vector<2x1xf32>
    %5 = math.rsqrt %4 : vector<2x1xf32>
    %6 = vector.broadcast %5 : vector<2x1xf32> to vector<2x32xf32>
    %7 = arith.mulf %0, %6 : vector<2x32xf32>
    %8 = arith.mulf %1, %1 : vector<8x32xf32>
    %cst_3 = arith.constant dense<0.000000e+00> : vector<8xf32>
    %9 = vector.multi_reduction <add>, %8, %cst_3 [1] : vector<8x32xf32> to vector<8xf32>
    %10 = vector.shape_cast %9 : vector<8xf32> to vector<8x1xf32>
    %11 = math.rsqrt %10 : vector<8x1xf32>
    %12 = vector.broadcast %11 : vector<8x1xf32> to vector<8x32xf32>
    %13 = arith.mulf %1, %12 : vector<8x32xf32>
    %cst_4 = arith.constant dense<0.000000e+00> : vector<2x8xf32>
    %14 = tpu.matmul %7, %13, %cst_4 {dimension_numbers = #tpu.dot_dimension_numbers<[1], [1], [0], [0], [0, 0, 1, 0], [], []>} : vector<2x32xf32>, vector<8x32xf32>, vector<2x8xf32> -> vector<2x8xf32>
    %cst_5 = arith.constant 14.2857141 : f32
    %15 = vector.broadcast %cst_5 : f32 to vector<2x8xf32>
    %16 = arith.mulf %14, %15 : vector<2x8xf32>
    %cst_6 = arith.constant dense<0xFF800000> : vector<2xf32>
    %17 = vector.multi_reduction <maximumf>, %16, %cst_6 [1] : vector<2x8xf32> to vector<2xf32>
    %18 = vector.shape_cast %17 : vector<2xf32> to vector<2x1xf32>
    %cst_7 = arith.constant dense<0xFF800000> : vector<1xf32>
    %19 = vector.multi_reduction <maximumf>, %18, %cst_7 [0] : vector<2x1xf32> to vector<1xf32>
    %20 = vector.shape_cast %19 : vector<1xf32> to vector<1x1xf32>
    %21 = vector.broadcast %20 : vector<1x1xf32> to vector<2x8xf32>
    %22 = arith.subf %16, %21 : vector<2x8xf32>
    %23 = math.exp %22 : vector<2x8xf32>
    %cst_8 = arith.constant dense<0.000000e+00> : vector<2xf32>
    %24 = vector.multi_reduction <add>, %23, %cst_8 [1] : vector<2x8xf32> to vector<2xf32>
    %25 = vector.shape_cast %24 : vector<2xf32> to vector<2x1xf32>
    %26 = math.log %25 : vector<2x1xf32>
    %27 = vector.broadcast %20 : vector<1x1xf32> to vector<2x1xf32>
    %28 = arith.addf %27, %26 : vector<2x1xf32>
    %cst_9 = arith.constant dense<0.000000e+00> : vector<1xf32>
    %29 = vector.multi_reduction <add>, %28, %cst_9 [0] : vector<2x1xf32> to vector<1xf32>
    %30 = vector.shape_cast %29 : vector<1xf32> to vector<1x1xf32>
    %cst_10 = arith.constant 4.000000e+00 : f32
    %31 = vector.broadcast %cst_10 : f32 to vector<1x1xf32>
    %32 = arith.mulf %30, %31 : vector<1x1xf32>
    %cst_11 = arith.constant dense<0.000000e+00> : vector<8xf32>
    %33 = vector.multi_reduction <add>, %23, %cst_11 [0] : vector<2x8xf32> to vector<8xf32>
    %34 = vector.shape_cast %33 : vector<8xf32> to vector<1x8xf32>
    %35 = math.log %34 : vector<1x8xf32>
    %36 = vector.broadcast %20 : vector<1x1xf32> to vector<1x8xf32>
    %37 = arith.addf %36, %35 : vector<1x8xf32>
    %cst_12 = arith.constant dense<0.000000e+00> : vector<1xf32>
    %38 = vector.multi_reduction <add>, %37, %cst_12 [1] : vector<1x8xf32> to vector<1xf32>
    %39 = vector.shape_cast %38 : vector<1xf32> to vector<1x1xf32>
    %cst_13 = arith.constant 11.0903549 : f32
    %40 = vector.broadcast %cst_13 : f32 to vector<1x1xf32>
    %41 = arith.addf %39, %40 : vector<1x1xf32>
    %42 = tpu.iota {dimensions = array<i32: 0>} : vector<2x8xi32>
    %43 = tpu.iota {dimensions = array<i32: 1>} : vector<2x8xi32>
    %c4_i32 = arith.constant 4 : i32
    %44 = vector.broadcast %c4_i32 : i32 to vector<2x8xi32>
    %45 = arith.muli %42, %44 : vector<2x8xi32>
    %46 = arith.cmpi sge, %43, %45 : vector<2x8xi32>
    %c4_i32_14 = arith.constant 4 : i32
    %47 = vector.broadcast %c4_i32_14 : i32 to vector<2x8xi32>
    %48 = arith.addi %45, %47 : vector<2x8xi32>
    %49 = arith.cmpi slt, %43, %48 : vector<2x8xi32>
    %50 = arith.andi %46, %49 : vector<2x8xi1>
    %cst_15 = arith.constant 0.000000e+00 : f32
    %51 = vector.broadcast %cst_15 : f32 to vector<2x8xf32>
    %52 = arith.select %50, %16, %51 : vector<2x8xi1>, vector<2x8xf32>
    %cst_16 = arith.constant dense<0.000000e+00> : vector<2xf32>
    %53 = vector.multi_reduction <add>, %52, %cst_16 [1] : vector<2x8xf32> to vector<2xf32>
    %54 = vector.shape_cast %53 : vector<2xf32> to vector<2x1xf32>
    %cst_17 = arith.constant dense<0.000000e+00> : vector<1xf32>
    %55 = vector.multi_reduction <add>, %54, %cst_17 [0] : vector<2x1xf32> to vector<1xf32>
    %56 = vector.shape_cast %55 : vector<1xf32> to vector<1x1xf32>
    %57 = arith.addf %32, %41 : vector<1x1xf32>
    %cst_18 = arith.constant 2.000000e+00 : f32
    %58 = vector.broadcast %cst_18 : f32 to vector<1x1xf32>
    %59 = arith.mulf %58, %56 : vector<1x1xf32>
    %60 = arith.subf %57, %59 : vector<1x1xf32>
    %cst_19 = arith.constant 6.250000e-02 : f32
    %61 = vector.broadcast %cst_19 : f32 to vector<1x1xf32>
    %62 = arith.mulf %60, %61 : vector<1x1xf32>
    %63 = vector.shape_cast %62 : vector<1x1xf32> to vector<1x1x1xf32>
    %cst_20 = arith.constant dense<0.000000e+00> : vector<1xf32>
    %64 = vector.multi_reduction <add>, %63, %cst_20 [1, 2] : vector<1x1x1xf32> to vector<1xf32>
    %65 = vector.shape_cast %64 : vector<1xf32> to vector<1x1x1xf32>
    %66 = vector.extract %65[0, 0, 0] : f32 from vector<1x1x1xf32>
    %c0_21 = arith.constant 0 : index
    %67 = memref.load %arg2[%c0_21] : memref<1xf32, #tpu.memory_space<smem>>
    memref.store %66, %arg2[%c0_21] : memref<1xf32, #tpu.memory_space<smem>>
    return
  }
}

</mosaic_0001>

<bundles_post_ra>
// kernel: tpu_custom_call.1
= control target key start
LH: loop header
LB: loop body
LE: loop exit
PB: predicated region body
PF: predicated region fallthrough
CT: control target
= control target key end

     0   :  { %7 = vsyncpa [#allocation3], 0  ;;  %s366_s0 = inlined_call_operand.hbm [shape: f32[2,32], index: 0, kind: input, shape index: {}]   ;;  %s367_s1 = inlined_call_operand.hbm [shape: f32[8,32], index: 1, kind: input, shape index: {}]   ;;  %s368_s2 = inlined_call_operand.hbm [shape: f32[1], index: 2, kind: output, shape index: {}]  }
   0x1   :  { %8 = vsyncpa [#allocation6], 0 }
   0x2   :  { %9 = vsyncpa [#allocation4], 0  ;;  %s301_s9 = smov [#allocation2]   ;;  %s302_s11 = smov [#allocation5]  }
   0x3   :  { %s16_s10 = sshll.u32 %s301_s9, 4  ;;  %s26_s12 = sshll.u32 %s302_s11, 4  ;;  %s17_s10 = int_to_ptr.vmem [resolvable:$true] %s16_s10  ;;  %s27_s12 = int_to_ptr.vmem [resolvable:$true] %s26_s12 }
   0x4   :  { %s241_s15 = scalar_lea.hbm %s366_s0, 32 }
   0x5   :  { %p242_p0 = scmp.ne.s32.totalorder %s366_s0, %s241_s15  ;;  %p245_p1 = scmp.lt.u32.totalorder %s241_s15, %s366_s0 }
   0x7   :  { %p247_p2 = pnand %p245_p1, %p242_p0 }
   0x9   :  { %250 = shalt.err (!%p247_p2)
}
   0xa   :  { %s251_s20 = scalar_lea.vmem %s17_s10, 32  ;;  %p256_p4 = scmp.lt.s32.totalorder %s17_s10, %s17_s10 }
   0xb   :  { %p252_p3 = scmp.ne.s32.totalorder %s17_s10, %s251_s20  ;;  %p257_p5 = scmp.lt.s32.totalorder %s251_s20, %s251_s20 }
   0xd   :  { %p258_p6 = por %p257_p5, %p256_p4 }
   0xf   :  { %p259_p7 = pnand %p258_p6, %p252_p3 }
  0x11   :  { %262 = shalt.err (!%p259_p7)
}
  0x12   :  { %19 = dma.hbm_to_vmem [thread:$0]  %s366_s0, 32, %s17_s10, [#allocation3]  }
  0x13   :  { %s263_s25 = scalar_lea.hbm %s367_s1, 128 }
  0x14   :  { %p264_p8 = scmp.ne.s32.totalorder %s367_s1, %s263_s25  ;;  %p267_p9 = scmp.lt.u32.totalorder %s263_s25, %s367_s1 }
  0x16   :  { %p269_p10 = pnand %p267_p9, %p264_p8 }
  0x18   :  { %272 = shalt.err (!%p269_p10)
}
  0x19   :  { %s273_s30 = scalar_lea.vmem %s27_s12, 128  ;;  %p278_p12 = scmp.lt.s32.totalorder %s27_s12, %s27_s12 }
  0x1a   :  { %p274_p11 = scmp.ne.s32.totalorder %s27_s12, %s273_s30  ;;  %p279_p13 = scmp.lt.s32.totalorder %s273_s30, %s273_s30 }
  0x1c   :  { %p280_p0 = por %p279_p13, %p278_p12 }
  0x1e   :  { %p281_p1 = pnand %p280_p0, %p274_p11 }
  0x20   :  { %284 = shalt.err (!%p281_p1)
}
  0x21   :  { %29 = dma.hbm_to_vmem [thread:$0]  %s367_s1, 128, %s27_s12, [#allocation6]  }
  0x22   :  { %295 = dma.done.wait [#allocation3], 32  }
  0x23   :  { %296 = vsyncadd [#allocation3], 4294967264 }
  0x24   :  { %297 = dma.done.wait [#allocation6], 128  }
  0x25   :  { %298 = vsyncadd [#allocation6], 4294967168  ;;  %v37_v0 = vld [vmem:[#allocation5] sm:$0xff]  ;;  %vm46_vm0 = vcmask 261120   ;;  %v36_v1 = vld [vmem:[#allocation2] sm:$0x3]  ;;  %v172_v13 = vlaneseq }
  0x26   :  { %v45_v2 = vmul.f32 %v37_v0, %v37_v0  ;;  %v38_v3 = vmul.f32 %v36_v1, %v36_v1  ;;  %vm39_vm1 = vcmask 254976   ;;  %v303_v6 = vmov 0.0   ;;  %s285_s6 = scalar_lea.hbm %s368_s2, 16 }
  0x27   :  { %219 = vmatprep.subr.mxu0 %v303_v6  ;;  %vm304_vm2 = vmmov 0   ;;  %v173_v14 = vshrl.u32 %v172_v13, 7  ;;  %v175_v16 = vand.u32 127, %v172_v13  ;;  %vm129_vm5 = vcmask 58368   ;;  %p286_p2 = scmp.ne.s32.totalorder %s368_s2, %s285_s6  ;;  %p289_p3 = scmp.lt.u32.totalorder %s285_s6, %s368_s2 }
  0x28   :  { %v47_v4 = vsel %vm46_vm0, %v45_v2, 0.0  ;;  %v40_v5 = vsel %vm39_vm1, %v38_v3, 0.0  ;;  %221 = vmatprep.mubr.msk.f32.mxu0 %vm304_vm2, %v303_v6  ;;  %vm133_vm7 = vcmask 1041408   ;;  %vm167_vm8 = vcmask 64512  }
  0x29   :  { %48 = vadd.xlane.f32.xlu0 %v47_v4  ;;  %v176_v15 = vmul.u32 4, %v173_v14  ;;  %p291_p4 = pnand %p289_p3, %p286_p2 }
  0x2b   :  { %v178_v17 = vadd.s32 4, %v176_v15  ;;  %vm177_vm3 = vcmp.ge.s32.totalorder %v175_v16, %v176_v15 }
  0x2d   :  { %41 = vadd.xlane.f32.xlu0 %v40_v5  ;;  %vm179_vm4 = vcmp.lt.s32.totalorder %v175_v16, %v178_v17 }
  0x2e   :  { %vm180_vm6 = vmand %vm177_vm3, %vm179_vm4 }
  0xb6   :  { %v49_v7 = vpop.xlane.xlu0 %48 }
  0xb7   :  { %231 = vrsqrt.f32 %v49_v7 }
  0xba   :  { %v42_v8 = vpop.xlane.xlu0 %41 }
  0xbb   :  { %233 = vrsqrt.f32 %v42_v8 }
  0xc1   :  { %v232_v9 = vpop.eup %231 }
  0xc2   :  { %v51_v10 = vmul.f32 %v232_v9, %v37_v0 }
  0xc4   :  { %220 = vmatpush3.xpose.msk.msra.mxu0 %vm46_vm0, %v51_v10 }
  0xc5   :  { %v234_v11 = vpop.eup %233 }
  0xc6   :  { %v44_v12 = vmul.f32 %v234_v11, %v36_v1 }
  0xc8   :  { %222 = vmatmul.mubr.msk.f32.vlgmr.msra.gmra.mrb[0].mxu0 %vm46_vm0, %v44_v12 }
 0x19b   :  { %v124_v18 = vpop.f32.mrb[0].mxu0 }
 0x19c   :  { %v128_v19 = vmul.f32 14.285714, %v124_v18  ;;  %v223_v20 = vpop.f32.mrb[1].mxu0 }
 0x19e   :  { %v130_v21 = vsel %vm129_vm5, %v128_v19, -inf  ;;  %v181_v22 = vsel %vm180_vm6, %v128_v19, 0.0 }
 0x19f   :  { %131 = vmax.xlane.f32.xlu1 %v130_v21  ;;  %v182_v23 = vsel %vm129_vm5, %v181_v22, 0.0 }
 0x1a0   :  { %183 = vadd.xlane.f32.xlu0 %v182_v23 }
 0x22c   :  { %v132_v24 = vpop.xlane.xlu1 %131 }
 0x22d   :  { %v134_v25 = vsel %vm133_vm7, %v132_v24, -inf  ;;  %v184_v47 = vpop.xlane.xlu0 %183 }
 0x22e   :  { %v135_v26 = vrot.slane %v134_v25, 4  ;;  %v185_v48 = vsel %vm133_vm7, %v184_v47, 0.0 }
 0x22f   :  { %v186_v49 = vrot.slane %v185_v48, 4 }
 0x230   :  { %v136_v27 = vmax.f32 %v134_v25, %v135_v26 }
 0x231   :  { %v187_v51 = vadd.f32 %v186_v49, %v185_v48 }
 0x232   :  { %v137_v28 = vrot.slane %v136_v27, 2 }
 0x233   :  { %v188_v54 = vrot.slane %v187_v51, 2 }
 0x234   :  { %v138_v29 = vmax.f32 %v136_v27, %v137_v28 }
 0x235   :  { %v189_v57 = vadd.f32 %v188_v54, %v187_v51 }
 0x236   :  { %v139_v30 = vrot.slane %v138_v29, 1 }
 0x237   :  { %v190_v61 = vrot.slane %v189_v57, 1 }
 0x238   :  { %v140_v31 = vmax.f32 %v138_v29, %v139_v30 }
 0x239   :  { %v191_v0 = vadd.f32 %v190_v61, %v189_v57 }
 0x23a   :  { %v141_v32 = vsub.f32 %v128_v19, %v140_v31 }
 0x23b   :  { %v193_v5 = vmul.f32 2.0, %v191_v0 }
 0x23c   :  { %v142_v33 = vmul.f32 1.442695, %v141_v32 }
 0x23e   :  { %235 = vpow2.f32 %v142_v33 }
 0x248   :  { %v236_v34 = vpop.eup %235 }
 0x249   :  { %v144_v35 = vsel %vm129_vm5, %v236_v34, 0.0 }
 0x24a   :  { %145 = vadd.xlane.f32.xlu1 %v144_v35  ;;  %v158_v36 = vrot.slane %v144_v35, 4 }
 0x24c   :  { %v159_v37 = vadd.f32 %v158_v36, %v144_v35 }
 0x24e   :  { %v160_v38 = vrot.slane %v159_v37, 2 }
 0x250   :  { %v161_v39 = vadd.f32 %v160_v38, %v159_v37 }
 0x252   :  { %v162_v40 = vrot.slane %v161_v39, 1 }
 0x254   :  { %v163_v41 = vadd.f32 %v162_v40, %v161_v39 }
 0x256   :  { %237 = vlog2.f32 %v163_v41 }
 0x260   :  { %v238_v42 = vpop.eup %237 }
 0x261   :  { %v165_v43 = vmul.f32 0.6931472, %v238_v42 }
 0x263   :  { %v166_v44 = vadd.f32 %v165_v43, %v140_v31 }
 0x265   :  { %v168_v45 = vsel %vm167_vm8, %v166_v44, 0.0 }
 0x266   :  { %169 = vadd.xlane.f32.xlu1 %v168_v45 }
 0x2d7   :  { %v146_v46 = vpop.xlane.xlu1 %145 }
 0x2d8   :  { %239 = vlog2.f32 %v146_v46 }
 0x2e2   :  { %v240_v50 = vpop.eup %239 }
 0x2e3   :  { %v148_v52 = vmul.f32 0.6931472, %v240_v50 }
 0x2e5   :  { %v149_v53 = vadd.f32 %v148_v52, %v140_v31 }
 0x2e7   :  { %v150_v55 = vsel %vm133_vm7, %v149_v53, 0.0 }
 0x2e8   :  { %v151_v56 = vrot.slane %v150_v55, 4 }
 0x2ea   :  { %v152_v58 = vadd.f32 %v151_v56, %v150_v55 }
 0x2ec   :  { %v153_v59 = vrot.slane %v152_v58, 2 }
 0x2ee   :  { %v154_v60 = vadd.f32 %v153_v59, %v152_v58 }
 0x2f0   :  { %v155_v62 = vrot.slane %v154_v60, 1 }
 0x2f2   :  { %v156_v63 = vadd.f32 %v155_v62, %v154_v60 }
 0x2f3   :  { %v170_v1 = vpop.xlane.xlu1 %169 }
 0x2f4   :  { %v157_v2 = vmul.f32 4.0, %v156_v63  ;;  %v171_v3 = vadd.f32 11.090355, %v170_v1 }
 0x2f6   :  { %v192_v4 = vadd.f32 %v171_v3, %v157_v2 }
 0x2f8   :  { %v194_v6 = vsub.f32 %v192_v4, %v193_v5 }
 0x2fa   :  { %v195_v7 = vmul.f32 0.0625, %v194_v6 }
 0x2fc   :  { %224 = vpush %v195_v7 }
 0x32d   :  { %s225_s1 = spop %224 }
 0x32e   :  { %199 = sst [smem:[#allocation7]] %s225_s1 }
 0x32f   :  { %294 = shalt.err (!%p291_p4)
}
 0x330   :  { %s305_s11 = smov [#allocation7]  }
 0x331   :  { %207 = dma.smem_to_hbm %s305_s11, 16, %s368_s2, [#allocation4]  }
 0x332   :  { %299 = dma.done.wait [#allocation4], 16  }
 0x333   :  { %300 = vsyncadd [#allocation4], 4294967280 }
 0x334   :  { %211 = sfence }
 0x335   :  { %212 = vsyncpa [#allocation3], 1 }
 0x336   :  { %213 = vsyncpa [#allocation6], 1 }
 0x337   :  { %214 = vsyncpa [#allocation4], 1 }

</bundles_post_ra>
